<compile_context>
chip_gen: v6e
topology: v6e:2x2x1
jax: 0.10.0
libtpu: 0.0.40
codegen_flags: <defaults>
</compile_context>

<pallas_src>
import functools

import jax
import jax.numpy as jnp
from jax import lax
from jax.experimental import pallas as pl
from jax.experimental.pallas import tpu as pltpu

LANES = 128
SUBLANES = 8
VREG = SUBLANES * LANES                 # 1024 elements = one (8,128) f32 vreg
MAX_TILE_ROWS = 8192                    # 8192 x 128 f32 = 4 MiB per block per input
VMEM_LIMIT_BYTES = 48 << 20             # > 2 inputs x 2 bufs x 4 MiB; < 64 MiB physical


def _num_tensorcores() -> int:
    """2 on v7x (two TensorCores per chip), 1 otherwise.  Safe fallback = 1."""
    try:
        kind = (getattr(jax.devices()[0], "device_kind", "") or "").lower()
        if "v7" in kind:
            return 2
    except Exception:
        pass
    return 1


def _accumulate(d3, abs_ref, sq_ref):
    # Fold (groups, 8, 128) into the (1, 8, 128) vector accumulators:
    # pure VPU adds; the cross-lane reduce is deferred to the wrapper.
    abs_ref[...] += jnp.sum(jnp.abs(d3), axis=0, keepdims=True)
    sq_ref[...] += jnp.sum(d3 * d3, axis=0, keepdims=True)


def _mat_partial_sums_kernel(p_ref, t_ref, abs_ref, sq_ref, *,
                             tile_rows, tiles_per_slice, num_tiles,
                             valid_rows, needs_mask):
    """Accumulates per-lane partial sums of |d| and d^2 for one row-slice."""
    s = pl.program_id(0)   # slice (parallel -> both TensorCores on v7x)
    j = pl.program_id(1)   # row tile within slice (reduction, "arbitrary")

    @pl.when(j == 0)
    def _():
        abs_ref[...] = jnp.zeros_like(abs_ref)
        sq_ref[...] = jnp.zeros_like(sq_ref)

    groups = tile_rows // SUBLANES

    def load_d3():
        d = p_ref[...].astype(jnp.float32) - t_ref[...].astype(jnp.float32)
        # Groups whole (8,128) vregs -> layout no-op.
        # TODO(synk): verify in the bundle dump this reshape lowers copy-free.
        return d.reshape(groups, SUBLANES, LANES)

    if not needs_mask:
        # Fast path: every tile of the grid is fully valid.
        _accumulate(load_d3(), abs_ref, sq_ref)
    else:
        blk = s * tiles_per_slice + j
        base_row = blk * tile_rows
        in_range = blk < num_tiles                      # surplus tile of a slice?
        full = base_row + tile_rows <= valid_rows       # ragged last tile?

        @pl.when(jnp.logical_and(in_range, full))
        def _():
            # Unmasked hot path (all but at most one tile per slice).
            _accumulate(load_d3(), abs_ref, sq_ref)

        @pl.when(jnp.logical_and(in_range, jnp.logical_not(full)))
        def _():
            # Ragged last tile: validity is per whole (8,128) vreg group since
            # the bulk is a multiple of 1024 elements.  Use select (NOT
            # multiply) so garbage rows of the edge block never propagate.
            d3 = load_d3()
            group_ids = lax.broadcasted_iota(jnp.int32, (groups, 1, 1), 0)
            valid_groups = (valid_rows - base_row) // SUBLANES
            d3 = jnp.where(group_ids < valid_groups, d3, 0.0)
            _accumulate(d3, abs_ref, sq_ref)


def mat_criterion(pred: jax.Array, target: jax.Array) -> jax.Array:
    """loss = L1Loss(pred, target) + sqrt(MSELoss(pred, target)) as a scalar."""
    assert pred.shape == target.shape, "pred and target must have the same shape"
    n = pred.size
    assert n > 0

    p = jnp.ravel(pred)
    t = jnp.ravel(target)

    n_bulk = (n // VREG) * VREG            # bulk handled by the kernel
    abs_sum = jnp.float32(0.0)
    sq_sum = jnp.float32(0.0)

    if n_bulk > 0:
        rows = n_bulk // LANES             # multiple of 8
        p2d = p[:n_bulk].reshape(rows, LANES)   # free view of contiguous prefix
        t2d = t[:n_bulk].reshape(rows, LANES)

        tile_rows = min(MAX_TILE_ROWS, rows)    # multiple of 8, <= rows
        num_tiles = pl.cdiv(rows, tile_rows)

        # Megacore split only where it helps: 2 TCs on v7x and enough tiles.
        num_slices = _num_tensorcores()
        if num_tiles < 2:
            num_slices = 1
        tiles_per_slice = pl.cdiv(num_tiles, num_slices)
        needs_mask = (rows % tile_rows != 0) or (num_tiles != num_slices * tiles_per_slice)
        last_tile = num_tiles - 1

        def in_map(s, j):
            blk = s * tiles_per_slice + j
            if needs_mask:
                # Keep the DMA in bounds for surplus tiles; pl.when skips their
                # compute so the clamped data is never used.
                blk = jnp.minimum(blk, last_tile)
            return (blk, 0)

        kernel = functools.partial(
            _mat_partial_sums_kernel,
            tile_rows=tile_rows,
            tiles_per_slice=tiles_per_slice,
            num_tiles=num_tiles,
            valid_rows=rows,
            needs_mask=needs_mask,
        )

        in_bytes = (pred.dtype.itemsize + target.dtype.itemsize) * n_bulk
        cost = pl.CostEstimate(
            flops=5 * n_bulk,
            transcendentals=0,
            bytes_accessed=in_bytes + 2 * num_slices * VREG * 4,
        )

        abs_part, sq_part = pl.pallas_call(
            kernel,
            out_shape=(
                jax.ShapeDtypeStruct((num_slices, SUBLANES, LANES), jnp.float32),
                jax.ShapeDtypeStruct((num_slices, SUBLANES, LANES), jnp.float32),
            ),
            grid_spec=pltpu.PrefetchScalarGridSpec(
                num_scalar_prefetch=0,
                grid=(num_slices, tiles_per_slice),
                in_specs=[
                    pl.BlockSpec((tile_rows, LANES), in_map),
                    pl.BlockSpec((tile_rows, LANES), in_map),
                ],
                out_specs=(
                    pl.BlockSpec((1, SUBLANES, LANES), lambda s, j: (s, 0, 0)),
                    pl.BlockSpec((1, SUBLANES, LANES), lambda s, j: (s, 0, 0)),
                ),
            ),
            compiler_params=pltpu.CompilerParams(
                # TODO(synk): if an xprof trace on v7x shows only one TC active,
                # switch this axis to pltpu.CORE_PARALLEL (or pl.core_map).
                dimension_semantics=("parallel", "arbitrary"),
                vmem_limit_bytes=VMEM_LIMIT_BYTES,
            ),
            cost_estimate=cost,
        )(p2d, t2d)

        abs_sum = abs_sum + jnp.sum(abs_part)
        sq_sum = sq_sum + jnp.sum(sq_part)

    if n_bulk < n:
        # Tail (< 1024 elements) in plain JAX -- avoids any pad copy of the bulk.
        d_tail = p[n_bulk:].astype(jnp.float32) - t[n_bulk:].astype(jnp.float32)
        abs_sum = abs_sum + jnp.sum(jnp.abs(d_tail))
        sq_sum = sq_sum + jnp.sum(d_tail * d_tail)

    inv_n = jnp.float32(1.0 / n)
    return abs_sum * inv_n + jnp.sqrt(sq_sum * inv_n)


def _reference(pred, target):
    d = pred.astype(jnp.float32) - target.astype(jnp.float32)
    mae = jnp.mean(jnp.abs(d))
    mse = jnp.mean(d * d)
    return mae + jnp.sqrt(mse)


if __name__ == "__main__":
    key = jax.random.PRNGKey(0)
    k1, k2, k3, k4 = jax.random.split(key, 4)

    # Small shapes consistent with a "matrix-property" regression target.
    shape = (2, 4, 16, 16)                  # 2048 elements -> pure bulk path
    pred = jax.random.normal(k1, shape, dtype=jnp.float32)
    target = jax.random.normal(k2, shape, dtype=jnp.float32)
    loss = jax.block_until_ready(mat_criterion(pred, target))
    ref = jax.block_until_ready(_reference(pred, target))
    assert jnp.allclose(loss, ref, rtol=1e-5, atol=1e-5), (loss, ref)

    # Non-multiple-of-1024 size exercises the bulk + JAX-tail split.
    shape2 = (3, 5, 11, 7)                  # 1155 elements -> 1024 bulk + 131 tail
    pred2 = jax.random.normal(k3, shape2, dtype=jnp.float32)
    target2 = jax.random.normal(k4, shape2, dtype=jnp.float32)
    loss2 = jax.block_until_ready(mat_criterion(pred2, target2))
    ref2 = jax.block_until_ready(_reference(pred2, target2))
    assert jnp.allclose(loss2, ref2, rtol=1e-5, atol=1e-5), (loss2, ref2)

    print("KERNEL_OK")
</pallas_src>

<mosaic_0001>
module attributes {stable_mosaic.version = 11 : i64} {
  func.func @_mat_partial_sums_kernel(%arg0: i32, %arg1: i32, %arg2: memref<16x128xf32, #tpu.memory_space<vmem>>, %arg3: memref<16x128xf32, #tpu.memory_space<vmem>>, %arg4: memref<1x8x128xf32, #tpu.memory_space<vmem>>, %arg5: memref<1x8x128xf32, #tpu.memory_space<vmem>>) attributes {dimension_semantics = [#tpu.dimension_semantics<parallel>, #tpu.dimension_semantics<arbitrary>], iteration_bounds = array<i64: 1, 1>, scalar_prefetch = 0 : i64, scratch_operands = 0 : i64, tpu.core_type = #tpu.core_type<tc>, window_params = [{transform_indices = @transform_0, window_bounds = array<i64: 16, 128>}, {transform_indices = @transform_1, window_bounds = array<i64: 16, 128>}, {transform_indices = @transform_2, window_bounds = array<i64: 1, 8, 128>}, {transform_indices = @transform_3, window_bounds = array<i64: 1, 8, 128>}]} {
    %c0_i32 = arith.constant 0 : i32
    %0 = arith.cmpi eq, %arg1, %c0_i32 : i32
    %1 = arith.extui %0 : i1 to i32
    %c0_i32_0 = arith.constant 0 : i32
    %2 = arith.cmpi ne, %1, %c0_i32_0 : i32
    scf.if %2 {
      %cst_17 = arith.constant 0.000000e+00 : f32
      %19 = vector.broadcast %cst_17 : f32 to vector<1x8x128xf32>
      %c0_18 = arith.constant 0 : index
      %c0_19 = arith.constant 0 : index
      %c0_20 = arith.constant 0 : index
      %20 = vector.load %arg4[%c0_18, %c0_19, %c0_20] : memref<1x8x128xf32, #tpu.memory_space<vmem>>, vector<1x8x128xf32>
      tpu.vector_store %arg4[%c0_18, %c0_19, %c0_20], %19 {strides = array<i32>} : memref<1x8x128xf32, #tpu.memory_space<vmem>>, vector<1x8x128xf32>,
      %cst_21 = arith.constant 0.000000e+00 : f32
      %21 = vector.broadcast %cst_21 : f32 to vector<1x8x128xf32>
      %c0_22 = arith.constant 0 : index
      %c0_23 = arith.constant 0 : index
      %c0_24 = arith.constant 0 : index
      %22 = vector.load %arg5[%c0_22, %c0_23, %c0_24] : memref<1x8x128xf32, #tpu.memory_space<vmem>>, vector<1x8x128xf32>
      tpu.vector_store %arg5[%c0_22, %c0_23, %c0_24], %21 {strides = array<i32>} : memref<1x8x128xf32, #tpu.memory_space<vmem>>, vector<1x8x128xf32>,
    } else {
    }
    %c0 = arith.constant 0 : index
    %c0_1 = arith.constant 0 : index
    %3 = vector.load %arg2[%c0, %c0_1] : memref<16x128xf32, #tpu.memory_space<vmem>>, vector<16x128xf32>
    %c0_2 = arith.constant 0 : index
    %c0_3 = arith.constant 0 : index
    %4 = vector.load %arg3[%c0_2, %c0_3] : memref<16x128xf32, #tpu.memory_space<vmem>>, vector<16x128xf32>
    %5 = arith.subf %3, %4 : vector<16x128xf32>
    %6 = vector.shape_cast %5 : vector<16x128xf32> to vector<2x8x128xf32>
    %c0_4 = arith.constant 0 : index
    %c0_5 = arith.constant 0 : index
    %c0_6 = arith.constant 0 : index
    %7 = vector.load %arg4[%c0_4, %c0_5, %c0_6] : memref<1x8x128xf32, #tpu.memory_space<vmem>>, vector<1x8x128xf32>
    %8 = math.absf %6 : vector<2x8x128xf32>
    %cst = arith.constant dense<0.000000e+00> : vector<8x128xf32>
    %9 = vector.multi_reduction <add>, %8, %cst [0] : vector<2x8x128xf32> to vector<8x128xf32>
    %10 = vector.shape_cast %9 : vector<8x128xf32> to vector<1x8x128xf32>
    %11 = arith.addf %7, %10 : vector<1x8x128xf32>
    %c0_7 = arith.constant 0 : index
    %c0_8 = arith.constant 0 : index
    %c0_9 = arith.constant 0 : index
    %12 = vector.load %arg4[%c0_7, %c0_8, %c0_9] : memref<1x8x128xf32, #tpu.memory_space<vmem>>, vector<1x8x128xf32>
    tpu.vector_store %arg4[%c0_7, %c0_8, %c0_9], %11 {strides = array<i32>} : memref<1x8x128xf32, #tpu.memory_space<vmem>>, vector<1x8x128xf32>,
    %c0_10 = arith.constant 0 : index
    %c0_11 = arith.constant 0 : index
    %c0_12 = arith.constant 0 : index
    %13 = vector.load %arg5[%c0_10, %c0_11, %c0_12] : memref<1x8x128xf32, #tpu.memory_space<vmem>>, vector<1x8x128xf32>
    %14 = arith.mulf %6, %6 : vector<2x8x128xf32>
    %cst_13 = arith.constant dense<0.000000e+00> : vector<8x128xf32>
    %15 = vector.multi_reduction <add>, %14, %cst_13 [0] : vector<2x8x128xf32> to vector<8x128xf32>
    %16 = vector.shape_cast %15 : vector<8x128xf32> to vector<1x8x128xf32>
    %17 = arith.addf %13, %16 : vector<1x8x128xf32>
    %c0_14 = arith.constant 0 : index
    %c0_15 = arith.constant 0 : index
    %c0_16 = arith.constant 0 : index
    %18 = vector.load %arg5[%c0_14, %c0_15, %c0_16] : memref<1x8x128xf32, #tpu.memory_space<vmem>>, vector<1x8x128xf32>
    tpu.vector_store %arg5[%c0_14, %c0_15, %c0_16], %17 {strides = array<i32>} : memref<1x8x128xf32, #tpu.memory_space<vmem>>, vector<1x8x128xf32>,
    return
  }
  func.func @transform_0(%arg0: i32, %arg1: i32) -> (i32, i32) {
    %c1_i32 = arith.constant 1 : i32
    %0 = arith.muli %arg0, %c1_i32 : i32
    %1 = arith.addi %0, %arg1 : i32
    %c0_i32 = arith.constant 0 : i32
    %c0_i32_0 = arith.constant 0 : i32
    return %1, %c0_i32 : i32, i32
  }
  func.func @transform_1(%arg0: i32, %arg1: i32) -> (i32, i32) {
    %c1_i32 = arith.constant 1 : i32
    %0 = arith.muli %arg0, %c1_i32 : i32
    %1 = arith.addi %0, %arg1 : i32
    %c0_i32 = arith.constant 0 : i32
    %c0_i32_0 = arith.constant 0 : i32
    return %1, %c0_i32 : i32, i32
  }
  func.func @transform_2(%arg0: i32, %arg1: i32) -> (i32, i32, i32) {
    %c0_i32 = arith.constant 0 : i32
    %c0_i32_0 = arith.constant 0 : i32
    %c0_i32_1 = arith.constant 0 : i32
    return %arg0, %c0_i32, %c0_i32_0 : i32, i32, i32
  }
  func.func @transform_3(%arg0: i32, %arg1: i32) -> (i32, i32, i32) {
    %c0_i32 = arith.constant 0 : i32
    %c0_i32_0 = arith.constant 0 : i32
    %c0_i32_1 = arith.constant 0 : i32
    return %arg0, %c0_i32, %c0_i32_0 : i32, i32, i32
  }
}

</mosaic_0001>

<bundles_post_ra>
// kernel: tpu_custom_call.1
= control target key start
LH: loop header
LB: loop body
LE: loop exit
PB: predicated region body
PF: predicated region fallthrough
CT: control target
= control target key end

     0   :  { %9 = vsyncpa [#allocation3], 0  ;;  %s242_s0 = inlined_call_operand.hbm [shape: f32[16,128], index: 0, kind: input, shape index: {}]   ;;  %s243_s1 = inlined_call_operand.hbm [shape: f32[16,128], index: 1, kind: input, shape index: {}]   ;;  %s244_s2 = inlined_call_operand.hbm [shape: f32[1,8,128], index: 2, kind: output, shape index: {0}]   ;;  %s245_s3 = inlined_call_operand.hbm [shape: f32[1,8,128], index: 3, kind: output, shape index: {1}]  }
   0x1   :  { %10 = vsyncpa [#allocation6], 0 }
   0x2   :  { %11 = vsyncpa [#allocation4], 0 }
   0x3   :  { %12 = vsyncpa [#allocation9], 0  ;;  %s204_s12 = smov [#allocation2]  }
   0x4   :  { %s22_s13 = sshll.u32 %s204_s12, 4  ;;  %s23_s13 = int_to_ptr.vmem [resolvable:$true] %s22_s13 }
   0x5   :  { %s124_s14 = scalar_lea.vmem %s23_s13, 256  ;;  %p129_p1 = scmp.lt.s32.totalorder %s23_s13, %s23_s13 }
   0x6   :  { %p125_p0 = scmp.ne.s32.totalorder %s23_s13, %s124_s14  ;;  %p130_p2 = scmp.lt.s32.totalorder %s124_s14, %s124_s14 }
   0x8   :  { %p131_p3 = por %p130_p2, %p129_p1 }
   0xa   :  { %p132_p4 = pnand %p131_p3, %p125_p0 }
   0xc   :  { %135 = shalt.err (!%p132_p4)
}
   0xd   :  { %s205_s15 = smov 128   ;;  %s206_s16 = smov 8  }
   0xe   :  { %28 = dma.hbm_to_vmem [thread:$0]  %s242_s0, 256, %s23_s13, [#allocation3], %s205_s15, %s205_s15, %s206_s16  }
   0xf   :  { %s207_s19 = smov [#allocation5]  }
  0x10   :  { %s38_s20 = sshll.u32 %s207_s19, 4  ;;  %s39_s20 = int_to_ptr.vmem [resolvable:$true] %s38_s20 }
  0x11   :  { %s144_s21 = scalar_lea.vmem %s39_s20, 256  ;;  %p149_p6 = scmp.lt.s32.totalorder %s39_s20, %s39_s20 }
  0x12   :  { %p145_p5 = scmp.ne.s32.totalorder %s39_s20, %s144_s21  ;;  %p150_p7 = scmp.lt.s32.totalorder %s144_s21, %s144_s21 }
  0x14   :  { %p151_p8 = por %p150_p7, %p149_p6 }
  0x16   :  { %p152_p9 = pnand %p151_p8, %p145_p5 }
  0x18   :  { %155 = shalt.err (!%p152_p9)
}
  0x19   :  { %44 = dma.hbm_to_vmem [thread:$0]  %s243_s1, 256, %s39_s20, [#allocation6], %s205_s15, %s205_s15, %s206_s16  }
  0x1a   :  { %196 = dma.done.wait [#allocation3], 256  }
  0x1b   :  { %197 = vsyncadd [#allocation3], 4294967040 }
  0x1c   :  { %198 = dma.done.wait [#allocation6], 256  }
  0x1d   :  { %199 = vsyncadd [#allocation6], 4294967040  ;;  %v61_v0 = vld [vmem:[#allocation2] sm:$0xff]  ;;  %v62_v1 = vld [vmem:[#allocation2 + $0x8] sm:$0xff]  ;;  %s208_s0 = smov [#allocation7]   ;;  %s209_s25 = smov [#allocation8]  }
  0x1e   :  { %v63_v2 = vld [vmem:[#allocation5] sm:$0xff]  ;;  %v64_v3 = vld [vmem:[#allocation5 + $0x8] sm:$0xff]  ;;  %s85_s24 = sshll.u32 %s208_s0, 4  ;;  %s95_s1 = sshll.u32 %s209_s25, 4  ;;  %s86_s24 = int_to_ptr.vmem [resolvable:$true] %s85_s24  ;;  %s96_s1 = int_to_ptr.vmem [resolvable:$true] %s95_s1 }
  0x1f   :  { %v65_v4 = vsub.f32 %v61_v0, %v63_v2  ;;  %v66_v5 = vsub.f32 %v62_v1, %v64_v3  ;;  %s156_s26 = scalar_lea.vmem %s86_s24, 128  ;;  %p161_p11 = scmp.lt.s32.totalorder %s86_s24, %s86_s24 }
  0x20   :  { %p157_p10 = scmp.ne.s32.totalorder %s86_s24, %s156_s26  ;;  %p162_p12 = scmp.lt.s32.totalorder %s156_s26, %s156_s26 }
  0x21   :  { %v68_v6 = vand.u32 2147483647, %v65_v4  ;;  %v74_v7 = vmul.f32 %v65_v4, %v65_v4  ;;  %v69_v8 = vand.u32 2147483647, %v66_v5  ;;  %v75_v9 = vmul.f32 %v66_v5, %v66_v5 }
  0x22   :  { %p163_p13 = por %p162_p12, %p161_p11 }
  0x23   :  { %v70_v10 = vadd.f32 %v69_v8, %v68_v6  ;;  %v76_v11 = vadd.f32 %v75_v9, %v74_v7 }
  0x24   :  { %p164_p0 = pnand %p163_p13, %p157_p10 }
  0x25   :  { %72 = vst [vmem:[#allocation7] sm:$0xff] %v70_v10  ;;  %78 = vst [vmem:[#allocation8] sm:$0xff] %v76_v11 }
  0x26   :  { %167 = shalt.err (!%p164_p0)
}
  0x27   :  { %88 = dma.vmem_to_hbm [thread:$0]  %s86_s24, 128, %s244_s2, [#allocation4]  }
  0x28   :  { %s176_s29 = scalar_lea.vmem %s96_s1, 128  ;;  %p181_p2 = scmp.lt.s32.totalorder %s96_s1, %s96_s1 }
  0x29   :  { %p177_p1 = scmp.ne.s32.totalorder %s96_s1, %s176_s29  ;;  %p182_p3 = scmp.lt.s32.totalorder %s176_s29, %s176_s29 }
  0x2b   :  { %p183_p4 = por %p182_p3, %p181_p2 }
  0x2d   :  { %p184_p5 = pnand %p183_p4, %p177_p1 }
  0x2f   :  { %187 = shalt.err (!%p184_p5)
}
  0x30   :  { %98 = dma.vmem_to_hbm [thread:$0]  %s96_s1, 128, %s245_s3, [#allocation9]  }
  0x31   :  { %200 = dma.done.wait [#allocation4], 128  }
  0x32   :  { %201 = vsyncadd [#allocation4], 4294967168 }
  0x33   :  { %202 = dma.done.wait [#allocation9], 128  }
  0x34   :  { %203 = vsyncadd [#allocation9], 4294967168 }
  0x35   :  { %105 = vsyncpa [#allocation3], 1 }
  0x36   :  { %106 = vsyncpa [#allocation6], 1 }
  0x37   :  { %107 = vsyncpa [#allocation4], 1 }
  0x38   :  { %108 = vsyncpa [#allocation9], 1 }

</bundles_post_ra>
